<compile_context>
chip_gen: v7x
topology: tpu7x:2x2x1
jax: 0.10.0
libtpu: 0.0.40
codegen_flags: <defaults>
</compile_context>

<pallas_src>
import jax
import jax.numpy as jnp
from jax.experimental import pallas as pl
from jax.experimental.pallas import tpu as pltpu

_VMEM_LIMIT = 32 * 1024 * 1024


def _pick_row_tile(n):
    # Parallel (output-row / edge-tile) axis: 256 feeds the 256x256 MXUs of
    # v6e/v7x, but keep >= 2 grid steps on the parallel axis so both v7x
    # TensorCores get work; 128 stays MXU-aligned on v5e.
    for t in (256, 128):
        if n % t == 0 and n // t >= 2:
            return t
    if n % 128 == 0:
        return 128
    return n


def _pick_reduce_tile(n, cap=1024):
    # Reduction-axis tile: bigger amortizes the ~0.35us/grid-step overhead and
    # keeps the HBM stream near roofline.
    t = cap
    while t >= 128:
        if n % t == 0:
            return t
        t //= 2
    return n


# ----------------------------------------------------------------------------
# 1) node_linear:  XW = x @ W   (hoisted out of the aggregation grid)
# ----------------------------------------------------------------------------
def node_linear_kernel(x_ref, w_ref, o_ref):
    o_ref[...] = jnp.dot(x_ref[...].astype(jnp.bfloat16),
                         w_ref[...].astype(jnp.bfloat16),
                         preferred_element_type=jnp.float32).astype(o_ref.dtype)


def node_linear(x, w):
    n, f = x.shape
    h = w.shape[1]
    tm = _pick_row_tile(n)
    assert n % tm == 0
    grid = (n // tm,)
    in_bytes = jnp.dtype(x.dtype).itemsize

    return pl.pallas_call(
        node_linear_kernel,
        out_shape=jax.ShapeDtypeStruct((n, h), jnp.bfloat16),
        grid_spec=pltpu.PrefetchScalarGridSpec(
            num_scalar_prefetch=0,
            grid=grid,
            in_specs=[
                pl.BlockSpec((tm, f), lambda i: (i, 0)),   # x row tile
                pl.BlockSpec((f, h), lambda i: (0, 0)),    # W (resident)
            ],
            out_specs=pl.BlockSpec((tm, h), lambda i: (i, 0)),
        ),
        compiler_params=pltpu.CompilerParams(
            dimension_semantics=("parallel",),
            vmem_limit_bytes=_VMEM_LIMIT,
        ),
        cost_estimate=pl.CostEstimate(
            flops=int(2 * n * f * h), transcendentals=0,
            bytes_accessed=int(in_bytes * n * f + 4 * f * h + 2 * n * h)),
    )(x, w)


# ----------------------------------------------------------------------------
# 2) adj_aggregate:  relu(adj @ XW + b)     (adj and XW arrive as bf16)
# ----------------------------------------------------------------------------
def adj_aggregate_kernel(adj_ref, xw_ref, b_ref, o_ref, acc_ref):
    k = pl.program_id(1)

    @pl.when(k == 0)
    def _():
        acc_ref[...] = jnp.zeros_like(acc_ref)

    acc_ref[...] += jnp.dot(adj_ref[...], xw_ref[...],
                            preferred_element_type=jnp.float32)   # (tm, H) f32

    @pl.when(k == pl.num_programs(1) - 1)
    def _():
        o_ref[...] = jnp.maximum(acc_ref[...] + b_ref[...], 0.0).astype(o_ref.dtype)


def adj_aggregate(adj_bf16, xw_bf16, b_row, out_dtype):
    n = adj_bf16.shape[0]
    h = xw_bf16.shape[1]
    tm = _pick_row_tile(n)
    tk = _pick_reduce_tile(n)
    assert n % tm == 0 and n % tk == 0
    grid = (n // tm, n // tk)

    flops = 2 * n * n * h
    bytes_accessed = (2 * n * n                   # adj stream (bf16)
                      + 2 * n * h * grid[0]       # XW re-streamed per row tile (bf16)
                      + 4 * h
                      + jnp.dtype(out_dtype).itemsize * n * h)

    return pl.pallas_call(
        adj_aggregate_kernel,
        out_shape=jax.ShapeDtypeStruct((n, h), out_dtype),
        grid_spec=pltpu.PrefetchScalarGridSpec(
            num_scalar_prefetch=0,
            grid=grid,
            in_specs=[
                pl.BlockSpec((tm, tk), lambda i, k: (i, k)),   # adj tile (bf16)
                pl.BlockSpec((tk, h), lambda i, k: (k, 0)),    # XW tile (bf16)
                pl.BlockSpec((1, h), lambda i, k: (0, 0)),     # bias (resident)
            ],
            out_specs=pl.BlockSpec((tm, h), lambda i, k: (i, 0)),
            scratch_shapes=[pltpu.VMEM((tm, h), jnp.float32)],
        ),
        compiler_params=pltpu.CompilerParams(
            dimension_semantics=("parallel", "arbitrary"),
            vmem_limit_bytes=_VMEM_LIMIT,
        ),
        cost_estimate=pl.CostEstimate(
            flops=int(flops), transcendentals=0,
            bytes_accessed=int(bytes_accessed)),
    )(adj_bf16, xw_bf16, b_row)


# ----------------------------------------------------------------------------
# 3) edge decoder:  sigmoid(|h[idx_j] - h[idx_i]| @ dW1 + db1) @ dW2 + db2
# ----------------------------------------------------------------------------
def edge_decoder_kernel(h_ref, idx_ref, dw1_ref, db1_ref, dw2_ref, db2_ref,
                        out_ref, diff_ref):
    nb = pl.program_id(1)
    te = idx_ref.shape[0]
    tn = h_ref.shape[0]

    @pl.when(nb == 0)
    def _():
        diff_ref[...] = jnp.zeros_like(diff_ref)

    # Exact f32 gather-as-matmul for this node tile:
    #   (onehot(idx_j) - onehot(idx_i)) @ h  ==  h[idx_j] - h[idx_i]
    # 0/+-1 selector with only two nonzero terms per row -> exact in f32.
    node_iota = nb * tn + jax.lax.broadcasted_iota(jnp.int32, (te, tn), 1)
    sel = ((idx_ref[:, 0:1] == node_iota).astype(jnp.float32)
           - (idx_ref[:, 1:2] == node_iota).astype(jnp.float32))       # (te, tn)
    diff_ref[...] += jnp.dot(sel, h_ref[...],
                             preferred_element_type=jnp.float32)        # (te, 64)

    @pl.when(nb == pl.num_programs(1) - 1)
    def _():
        x = jnp.abs(diff_ref[...])
        z = jnp.dot(x, dw1_ref[...],
                    preferred_element_type=jnp.float32) + db1_ref[...]  # (te, 16)
        s = jax.nn.sigmoid(z)
        # decoder2 (16 -> 1) as a VPU multiply-reduce; lane-dense (1, te) store.
        o = jnp.sum(s * dw2_ref[...], axis=-1)
        out_ref[...] = o.reshape(1, te) + db2_ref[...]


def edge_decoder(h, idx2, dw1, db1_row, dw2_row, db2_11):
    n, hd = h.shape
    e = idx2.shape[0]
    d1 = dw1.shape[1]
    te = _pick_row_tile(e)
    tn = _pick_reduce_tile(n, cap=256)   # keeps the (te, tn) selector modest
    assert e % te == 0 and n % tn == 0
    grid = (e // te, n // tn)

    flops = 2 * e * n * hd + 2 * e * hd * d1 + 2 * e * d1
    transcendentals = e * d1
    bytes_accessed = (4 * n * hd * grid[0] + 4 * 2 * e
                      + 4 * (hd * d1 + 2 * d1 + 1) + 4 * e)

    return pl.pallas_call(
        edge_decoder_kernel,
        out_shape=jax.ShapeDtypeStruct((1, e), jnp.float32),
        grid_spec=pltpu.PrefetchScalarGridSpec(
            num_scalar_prefetch=0,
            grid=grid,
            in_specs=[
                pl.BlockSpec((tn, hd), lambda eb, nb: (nb, 0)),   # h2 node tile
                pl.BlockSpec((te, 2), lambda eb, nb: (eb, 0)),    # idx tile
                pl.BlockSpec((hd, d1), lambda eb, nb: (0, 0)),    # decoder1 W
                pl.BlockSpec((1, d1), lambda eb, nb: (0, 0)),     # decoder1 b
                pl.BlockSpec((1, d1), lambda eb, nb: (0, 0)),     # decoder2 W (row)
                pl.BlockSpec((1, 1), lambda eb, nb: (0, 0)),      # decoder2 b
            ],
            out_specs=pl.BlockSpec((1, te), lambda eb, nb: (0, eb)),
            scratch_shapes=[pltpu.VMEM((te, hd), jnp.float32)],
        ),
        compiler_params=pltpu.CompilerParams(
            dimension_semantics=("parallel", "arbitrary"),
            vmem_limit_bytes=_VMEM_LIMIT,
        ),
        cost_estimate=pl.CostEstimate(
            flops=int(flops), transcendentals=int(transcendentals),
            bytes_accessed=int(bytes_accessed)),
    )(h, idx2, dw1, db1_row, dw2_row, db2_11)


# ----------------------------------------------------------------------------
# Full model forward
# ----------------------------------------------------------------------------
def gcn_model_forward(features, adj, idx, params):
    (w1, b1, w2, b2, dw1, db1, dw2, db2) = params

    # adj is only ever consumed as a bf16 MXU operand: ship it from HBM as bf16
    # once (halves the dominant, bandwidth-bound N^2 stream; reused by both layers).
    adj_bf16 = adj.astype(jnp.bfloat16)

    xw1 = node_linear(features, w1)                                    # (N,128) bf16
    h1 = adj_aggregate(adj_bf16, xw1, b1.reshape(1, -1), jnp.bfloat16)
    # TODO(synk): F.dropout(p=0.25) skipped (inference / eval mode: identity).
    xw2 = node_linear(h1, w2)                                          # (N, 64) bf16
    h2 = adj_aggregate(adj_bf16, xw2, b2.reshape(1, -1), jnp.float32)

    idx2 = jnp.asarray(idx, jnp.int32).T    # (E,2): col0 = idx[0] (j), col1 = idx[1] (i)
    out = edge_decoder(h2, idx2, dw1, db1.reshape(1, -1),
                       dw2.reshape(1, -1), db2.reshape(1, 1))
    return out.reshape(-1)                   # torch.flatten(o)


# ----------------------------------------------------------------------------
# References
# ----------------------------------------------------------------------------
def reference_forward_f32(features, adj, idx, params):
    (w1, b1, w2, b2, dw1, db1, dw2, db2) = params
    x = jnp.maximum(adj @ (features @ w1) + b1, 0.0)
    x = jnp.maximum(adj @ (x @ w2) + b2, 0.0)
    d = jnp.abs(x[idx[0]] - x[idx[1]])
    d = jax.nn.sigmoid(d @ dw1 + db1)
    o = d @ dw2 + db2
    return o.reshape(-1)


def reference_forward_match(features, adj, idx, params):
    # Matches kernel numerics: bf16 MXU operands with f32 accumulation in the
    # GCN layers; exact f32 gather + f32 decoder.
    (w1, b1, w2, b2, dw1, db1, dw2, db2) = params

    def mm(a, b):
        return jnp.dot(a.astype(jnp.bfloat16), b.astype(jnp.bfloat16),
                       preferred_element_type=jnp.float32)

    x = jnp.maximum(mm(adj, mm(features, w1)) + b1, 0.0)
    x = jnp.maximum(mm(adj, mm(x, w2)) + b2, 0.0)
    d = jnp.abs(x[idx[0]] - x[idx[1]])
    d = jax.nn.sigmoid(d @ dw1 + db1)
    o = d @ dw2 + db2
    return o.reshape(-1)


if __name__ == "__main__":
    key = jax.random.PRNGKey(0)
    N, F, E = 256, 16, 256   # nodes, features, edges

    keys = jax.random.split(key, 10)
    features = jax.random.normal(keys[0], (N, F), jnp.float32)
    adj = (jax.random.uniform(keys[1], (N, N)) < 0.1).astype(jnp.float32)
    adj = jnp.clip(adj + jnp.eye(N, dtype=jnp.float32), 0.0, 1.0)   # self loops
    adj = adj / jnp.sum(adj, axis=1, keepdims=True)                 # row-normalized
    idx = jax.random.randint(keys[2], (2, E), 0, N, dtype=jnp.int32)

    def init_w(k, fan_in, fan_out):
        return jax.random.normal(k, (fan_in, fan_out), jnp.float32) / jnp.sqrt(fan_in)

    w1 = init_w(keys[3], F, 128)
    b1 = 0.01 * jax.random.normal(keys[4], (128,), jnp.float32)
    w2 = init_w(keys[5], 128, 64)
    b2 = 0.01 * jax.random.normal(keys[6], (64,), jnp.float32)
    dw1 = init_w(keys[7], 64, 16)
    db1 = 0.01 * jax.random.normal(keys[8], (16,), jnp.float32)
    dw2 = init_w(keys[9], 16, 1)
    db2 = jnp.zeros((1,), jnp.float32)
    params = (w1, b1, w2, b2, dw1, db1, dw2, db2)

    out = jax.block_until_ready(gcn_model_forward(features, adj, idx, params))
    assert out.shape == (E,)

    ref_match = reference_forward_match(features, adj, idx, params)  # kernel numerics
    ref_f32 = reference_forward_f32(features, adj, idx, params)      # torch f32 semantics
    assert jnp.allclose(out, ref_match, atol=2e-3, rtol=2e-3), \
        float(jnp.max(jnp.abs(out - ref_match)))
    assert jnp.allclose(out, ref_f32, atol=5e-2, rtol=5e-2), \
        float(jnp.max(jnp.abs(out - ref_f32)))

    print("KERNEL_OK")
</pallas_src>

<mosaic_0001>
module attributes {stable_mosaic.version = 11 : i64} {
  func.func @node_linear_kernel(%arg0: i32, %arg1: memref<128x16xf32, #tpu.memory_space<vmem>>, %arg2: memref<16x128xf32, #tpu.memory_space<vmem>>, %arg3: memref<128x128xbf16, #tpu.memory_space<vmem>>) attributes {dimension_semantics = [#tpu.dimension_semantics<parallel>], iteration_bounds = array<i64: 2>, scalar_prefetch = 0 : i64, scratch_operands = 0 : i64, tpu.core_type = #tpu.core_type<tc>, window_params = [{transform_indices = @transform_0, window_bounds = array<i64: 128, 16>}, {pipeline_mode = #tpu.pipeline_mode<synchronous>, transform_indices = @transform_1, window_bounds = array<i64: 16, 128>}, {transform_indices = @transform_2, window_bounds = array<i64: 128, 128>}]} {
    %c0 = arith.constant 0 : index
    %c0_0 = arith.constant 0 : index
    %0 = vector.load %arg1[%c0, %c0_0] : memref<128x16xf32, #tpu.memory_space<vmem>>, vector<128x16xf32>
    %1 = arith.truncf %0 : vector<128x16xf32> to vector<128x16xbf16>
    %c0_1 = arith.constant 0 : index
    %c0_2 = arith.constant 0 : index
    %2 = vector.load %arg2[%c0_1, %c0_2] : memref<16x128xf32, #tpu.memory_space<vmem>>, vector<16x128xf32>
    %3 = arith.truncf %2 : vector<16x128xf32> to vector<16x128xbf16>
    %cst = arith.constant dense<0.000000e+00> : vector<128x128xf32>
    %4 = tpu.matmul %1, %3, %cst {dimension_numbers = #tpu.dot_dimension_numbers<[1], [0], [0], [1], [0, 0, 1, 1], [], []>} : vector<128x16xbf16>, vector<16x128xbf16>, vector<128x128xf32> -> vector<128x128xf32>
    %5 = arith.truncf %4 : vector<128x128xf32> to vector<128x128xbf16>
    %c0_3 = arith.constant 0 : index
    %c0_4 = arith.constant 0 : index
    %6 = vector.load %arg3[%c0_3, %c0_4] : memref<128x128xbf16, #tpu.memory_space<vmem>>, vector<128x128xbf16>
    tpu.vector_store %arg3[%c0_3, %c0_4], %5 {strides = array<i32>} : memref<128x128xbf16, #tpu.memory_space<vmem>>, vector<128x128xbf16>,
    return
  }
  func.func @transform_0(%arg0: i32) -> (i32, i32) {
    %c0_i32 = arith.constant 0 : i32
    %c0_i32_0 = arith.constant 0 : i32
    return %arg0, %c0_i32 : i32, i32
  }
  func.func @transform_1(%arg0: i32) -> (i32, i32) {
    %c0_i32 = arith.constant 0 : i32
    %c0_i32_0 = arith.constant 0 : i32
    %c0_i32_1 = arith.constant 0 : i32
    return %c0_i32, %c0_i32_0 : i32, i32
  }
  func.func @transform_2(%arg0: i32) -> (i32, i32) {
    %c0_i32 = arith.constant 0 : i32
    %c0_i32_0 = arith.constant 0 : i32
    return %arg0, %c0_i32 : i32, i32
  }
}

</mosaic_0001>

<bundles_post_ra>
// kernel: tpu_custom_call.1
= control target key start
LH: loop header
LB: loop body
LE: loop exit
PB: predicated region body
PF: predicated region fallthrough
CT: control target
= control target key end

     0   :  { %7 = vsyncpa [#allocation3], 0  ;;  %s823_s0 = inlined_call_operand.vmem [shape: f32[256,16], index: 0, kind: input, shape index: {}]   ;;  %s824_s1 = inlined_call_operand.vmem [shape: f32[16,128], index: 1, kind: input, shape index: {}]   ;;  %s825_s2 = inlined_call_operand.hbm [shape: bf16[256,128], index: 2, kind: output, shape index: {}]  }
   0x1   :  { %9 = vsyncpa [#allocation3 + $0x1], 0  ;;  %s703_s9 = smov 0   ;;  %s705_s10 = smov 0  }
   0x2   :  { %s707_s11 = smov 0   ;;  %s709_s12 = smov 0  }
   0x3 LB: > { %s724_s13 = sadd.s32 4294967295, %s683_s12   ;;  %s451_s14 = sadd.s32 4294967294, %s683_s12   ;;  %s683_s12 = sphi %s709_s12, %s831_s12   ;;  %s679_s11 = sphi %s707_s11, %s830_s11   ;;  %s675_s10 = sphi %s705_s10, %s829_s10   ;;  %s671_s9 = sphi %s703_s9, %s828_s9  }
   0x4   : > { %s728_s15 = sadd.s32 1, %s683_s12   ;;  %s69_s16 = sadd.s32 1, %s679_s11 }
   0x5   : > { %s66_s17 = ssub.s32 %s683_s12, %s728_s15  ;;  %p79_p0 = scmp.ne.s32.totalorder %s679_s11, %s675_s10 }
   0x6   : > { %p67_p1 = scmp.eq.s32.totalorder %s66_s17, 0  ;;  %p80_p2 = scmp.eq.s32.totalorder %s724_s13, 1 }
   0x7   : > { %p85_p3 = scmp.ne.s32.totalorder %s675_s10, %s671_s9  ;;  %p86_p4 = scmp.eq.s32.totalorder %s451_s14, 1 }
   0x8   : > { %s739_s18 = scalar_select %p67_p1, %s679_s11, %s69_s16  }
   0x9   : > { %p741_p5 = por %p80_p2, %p79_p0  ;;  %p745_p6 = por %p86_p4, %p85_p3 }
   0xa   : > { %p454_p7 = scmp.ge.s32.totalorder %s683_s12, 1  ;;  %p116_p8 = scmp.lt.s32.totalorder %s683_s12, 3 }
   0xc   : > { %p117_p9 = pnand %p454_p7, %p116_p8 }
   0xd   : > { %v170_v0 = vld [vmem:[%s824_s1] sm:$0xff] (!%p117_p9)  ;;  %v171_v1 = vld [vmem:[%s824_s1 + $0x8] sm:$0xff] (!%p117_p9)  ;;  %s456_s25 = sshll.u32 (!%p117_p9), %s724_s13, 4  ;;  %vm173_vm0 = vcmask (!%p117_p9), 130048   ;;  %s135_s30 = sand.u32 (!%p117_p9), 1, %s675_s10  }
   0xe   : > { %120 = sbr.rel (%p117_p9) target bundleno = 269 (0x10d), region = 28  ;;  %v172_v2 = vpack.c.bf16 (!%p117_p9), %v171_v1, %v170_v0  ;;  %p139_p10 = scmp.lt.s32.totalorder (!%p117_p9), %s456_s25, 31 }
   0xf   : > { %s455_s3 = sshll.u32 (!%p117_p9), %s135_s30, 6  ;;  %s503_s5 = sshll.u32 (!%p117_p9), %s724_s13, 10 }
  0x10   : > { %560 = vmatprep.subr.bf16.mxu0 (!%p117_p9), %v172_v2  ;;  %578 = vmatprep.subr.bf16.mxu1 (!%p117_p9), %v172_v2  ;;  %s137_s4 = scalar_lea.vmem (!%p117_p9), [#allocation2], %s455_s3  ;;  %s776_s14 = scalar_lea.hbm (!%p117_p9), %s825_s2, %s503_s5 }
  0x11   : > { %561 = vmatpush3.bf16.msra.mxu0 (!%p117_p9), %v172_v2  ;;  %579 = vmatpush3.bf16.msra.mxu1 (!%p117_p9), %v172_v2  ;;  %s389_s6 = sshll.u32 (!%p117_p9), %s137_s4, 4  ;;  %s782_s13 = scalar_lea.sflag (!%p117_p9), [#allocation3], %s135_s30  ;;  %s778_s6 = int_to_ptr.vmem [resolvable:$true] %s389_s6 }
  0x12   : > { %s621_s16 = scalar_lea.vmem (!%p117_p9), %s778_s6, 1024  ;;  %s685_s17 = smov (!%p117_p9), [#allocation2]  }
  0x13   : > { %p622_p11 = scmp.ne.s32.totalorder (!%p117_p9), %s778_s6, %s621_s16  ;;  %s625_s21 = sshll.u32 (!%p117_p9), %s685_s17, 4  ;;  %s626_s21 = int_to_ptr.vmem [resolvable:$false] %s625_s21 }
  0x14   : > { %s627_s22 = scalar_lea.vmem (!%p117_p9), %s626_s21, 2048  ;;  %p628_p0 = scmp.lt.s32.totalorder (!%p117_p9), %s778_s6, %s626_s21 }
  0x15   : > { %s833_s25 = smov (!%p139_p10, %s456_s25), 31  ;;  %p623_p12 = pnand %p622_p11, %p741_p5 }
  0x16   : > { %s457_s26 = sshll.u32 %s833_s25, 3  ;;  %p629_p1 = scmp.lt.s32.totalorder %s627_s22, %s621_s16 }
  0x17   : > { %s142_s29 = scalar_lea.vmem %s823_s0, %s457_s26  ;;  %p624_p13 = pneg %p623_p12 }
  0x18   : > { %v146_v3 = vld [vmem:[%s142_s29] sm:$0xff]  ;;  %v147_v4 = vld [vmem:[%s142_s29 + $0x8] sm:$0xff]  ;;  %v148_v8 = vld [vmem:[%s142_s29 + $0x10] sm:$0xff]  ;;  %p630_p2 = por %p629_p1, %p628_p0 }
  0x19   : > { %v154_v5 = vld [vmem:[%s142_s29 + $0x40] sm:$0xff]  ;;  %v162_v6 = vpack.c.bf16 %v147_v4, %v146_v3  ;;  %v155_v7 = vld [vmem:[%s142_s29 + $0x48] sm:$0xff]  ;;  %v149_v9 = vld [vmem:[%s142_s29 + $0x18] sm:$0xff] }
  0x1a   : > { %v166_v10 = vpack.c.bf16 %v155_v7, %v154_v5  ;;  %v163_v11 = vpack.c.bf16 %v149_v9, %v148_v8  ;;  %v156_v12 = vld [vmem:[%s142_s29 + $0x50] sm:$0xff]  ;;  %v157_v13 = vld [vmem:[%s142_s29 + $0x58] sm:$0xff]  ;;  %v150_v14 = vld [vmem:[%s142_s29 + $0x20] sm:$0xff]  ;;  %p631_p3 = pnand %p630_p2, %p624_p13 }
  0x1b   : > { %562 = vmatprep.mubr.msk.bf16.mxu0 %vm173_vm0, %v162_v6  ;;  %v167_v15 = vpack.c.bf16 %v157_v13, %v156_v12  ;;  %v151_v16 = vld [vmem:[%s142_s29 + $0x28] sm:$0xff]  ;;  %v158_v17 = vld [vmem:[%s142_s29 + $0x60] sm:$0xff]  ;;  %v152_v21 = vld [vmem:[%s142_s29 + $0x30] sm:$0xff] }
  0x1c   : > { %v159_v18 = vld [vmem:[%s142_s29 + $0x68] sm:$0xff]  ;;  %570 = vmatprep.mubr.msk.bf16.mxu1 %vm173_vm0, %v166_v10  ;;  %563 = vmatmul.mubr.msk.bf16.vlgmr.msra.gmra.mrb[0].mxu0 %vm173_vm0, %v163_v11  ;;  %v164_v19 = vpack.c.bf16 %v151_v16, %v150_v14  ;;  %v153_v22 = vld [vmem:[%s142_s29 + $0x38] sm:$0xff]  ;;  %v160_v23 = vld [vmem:[%s142_s29 + $0x70] sm:$0xff] }
  0x1d   : > { %v168_v20 = vpack.c.bf16 %v159_v18, %v158_v17  ;;  %571 = vmatmul.mubr.msk.bf16.vlgmr.msra.gmra.mrb[0].mxu1 %vm173_vm0, %v167_v15  ;;  %v161_v24 = vld [vmem:[%s142_s29 + $0x78] sm:$0xff]  ;;  %v165_v25 = vpack.c.bf16 %v153_v22, %v152_v21 }
  0x1e   : > { %566 = vmatprep.mubr.msk.bf16.mxu0 %vm173_vm0, %v164_v19  ;;  %v169_v26 = vpack.c.bf16 %v161_v24, %v160_v23 }
  0x1f   : > { %574 = vmatprep.mubr.msk.bf16.mxu1 %vm173_vm0, %v168_v20 }
  0x24   : > { %567 = vmatmul.mubr.msk.bf16.gmra.mrb[4].mxu0 %vm173_vm0, %v165_v25 }
  0x25   : > { %575 = vmatmul.mubr.msk.bf16.gmra.mrb[4].mxu1 %vm173_vm0, %v169_v26 }
  0xef   : > { %v564_v27 = vpop.f32.mrb[0].mxu0 }
  0xf0   : > { %v572_v28 = vpop.f32.mrb[0].mxu1  ;;  %v232_v29 = vpop.f32.mrb[1].mxu0 }
  0xf1   : > { %v264_v30 = vpop.f32.mrb[1].mxu1  ;;  %v565_v31 = vpop.f32.mrb[2].mxu0 }
  0xf2   : > { %v512_v32 = vpack.c.bf16 %v565_v31, %v564_v27  ;;  %v573_v33 = vpop.f32.mrb[2].mxu1  ;;  %v235_v34 = vpop.f32.mrb[3].mxu0 }
  0xf3   : > { %v532_v35 = vpack.c.bf16 %v573_v33, %v572_v28  ;;  %v507_v36 = vpack.c.bf16 %v235_v34, %v232_v29  ;;  %v267_v37 = vpop.f32.mrb[3].mxu1 }
  0xf4   : > { %544 = vst [vmem:[%s137_s4 + $0x8] sm:$0xff] %v512_v32   ;;  %v527_v38 = vpack.c.bf16 %v267_v37, %v264_v30 }
  0xf5   : > { %548 = vst [vmem:[%s137_s4 + $0x28] sm:$0xff] %v532_v35   ;;  %508 = vst [vmem:[%s137_s4] sm:$0xff] %v507_v36  }
  0xf6   : > { %547 = vst [vmem:[%s137_s4 + $0x20] sm:$0xff] %v527_v38  }
  0xf7   : > { %v568_v39 = vpop.f32.mrb[4].mxu0 }
  0xf8   : > { %v576_v40 = vpop.f32.mrb[4].mxu1  ;;  %v248_v41 = vpop.f32.mrb[5].mxu0 }
  0xf9   : > { %v280_v42 = vpop.f32.mrb[5].mxu1  ;;  %v569_v43 = vpop.f32.mrb[6].mxu0 }
  0xfa   : > { %v522_v44 = vpack.c.bf16 %v569_v43, %v568_v39  ;;  %v577_v45 = vpop.f32.mrb[6].mxu1  ;;  %v251_v46 = vpop.f32.mrb[7].mxu0 }
  0xfb   : > { %v542_v47 = vpack.c.bf16 %v577_v45, %v576_v40  ;;  %v517_v48 = vpack.c.bf16 %v251_v46, %v248_v41  ;;  %v283_v49 = vpop.f32.mrb[7].mxu1 }
  0xfc   : > { %546 = vst [vmem:[%s137_s4 + $0x18] sm:$0xff] %v522_v44   ;;  %v537_v50 = vpack.c.bf16 %v283_v49, %v280_v42 }
  0xfd   : > { %550 = vst [vmem:[%s137_s4 + $0x38] sm:$0xff] %v542_v47   ;;  %545 = vst [vmem:[%s137_s4 + $0x10] sm:$0xff] %v517_v48  }
  0xfe   : > { %549 = vst [vmem:[%s137_s4 + $0x30] sm:$0xff] %v537_v50  }
  0xff   : > { %634 = shalt.err (!%p631_p3)
}
 0x100   : > { %s635_s23 = scalar_lea.hbm %s776_s14, 1024  ;;  %s639_s26 = scalar_lea.hbm %s825_s2, 2048 }
 0x101   : > { %p636_p4 = scmp.ne.s32.totalorder %s776_s14, %s635_s23  ;;  %p640_p9 = scmp.lt.u32.totalorder %s776_s14, %s825_s2 }
 0x102   : > { %p641_p10 = scmp.lt.u32.totalorder %s639_s26, %s635_s23  ;;  %p643_p12 = scmp.lt.u32.totalorder %s635_s23, %s776_s14 }
 0x103   : > { %p637_p7 = pnand %p636_p4, %p741_p5 }
 0x104   : > { %p642_p11 = por %p641_p10, %p640_p9 }
 0x105   : > { %p638_p8 = pneg %p637_p7 }
 0x106   : > { %p644_p13 = por %p643_p12, %p642_p11 }
 0x108   : > { %p645_p0 = pnand %p644_p13, %p638_p8 }
 0x10a   : > { %648 = shalt.err (!%p645_p0)
}
 0x10b   : > { %s686_s29 = smov 64   ;;  %s687_s30 = smov 4  }
 0x10c   : > { %580 = dma.vmem_to_hbm [thread:$0]  (%p741_p5), %s778_s6, 1024, %s776_s14, %s782_s13, %s686_s29, %s686_s29, %s687_s30  }
 0x10d PF: > { %p586_p1 = scmp.ge.s32.totalorder %s683_s12, 2  ;;  %s404_s3 = sand.u32 1, %s671_s9  }
 0x10e   : > { %s405_s4 = scalar_lea.sflag [#allocation3], %s404_s3 }
 0x10f   : > { %p583_p2 = pnand %p586_p1, %p745_p6 }
 0x111   : > { %666 = dma.done.wait (!%p583_p2), %s405_s4, 1024  }
 0x112   : > { %668 = vsyncadd (!%p583_p2), %s405_s4, 4294966272  ;;  %p12_p3 = scmp.ge.s32.totalorder %s728_s15, 4   ;;  %s828_s9 = smov %s675_s10 }
 0x113   : > { %s829_s10 = smov %s679_s11  ;;  %s830_s11 = smov %s739_s18 }
 0x114   : > { %s831_s12 = smov %s728_s15  ;;  %14 = sbr.rel (!%p12_p3) target bundleno = 3 (0x3), region = 63 }
 0x11b   :  { %410 = vsyncpa [#allocation3], 1 }
 0x11c   :  { %412 = vsyncpa [#allocation3 + $0x1], 1 }

</bundles_post_ra>
